<compile_context>
chip_gen: v7x
topology: tpu7x:2x2x1
jax: 0.10.0
libtpu: 0.0.40
codegen_flags: <defaults>
</compile_context>

<pallas_src>
import functools

import jax
import jax.numpy as jnp
from jax import lax
from jax.experimental import pallas as pl
from jax.experimental.pallas import tpu as pltpu

LEAKY_SLOPE = 0.01   # nn.LeakyReLU default negative_slope
BN_EPS = 1e-5        # nn.BatchNorm1d default eps


def _leaky_relu(x):
    return jnp.where(x >= 0, x, LEAKY_SLOPE * x)


def mlp_kernel(x_ref, w1_ref, w2_ref, w3_ref, b1_ref, b2_ref, b3_ref, o_ref):
    """Whole forward pass for one batch tile.

    x_ref is a natural-layout (TB, F_in) tile; any out-of-range rows of the
    last (ragged) tile contain undefined data whose output lanes Pallas masks
    off on store.  All intermediates are feature-major (H, TB) so the batch
    lives on the lane axis and the (1, TB) output block is lane-dense.
    """
    x_bf = x_ref[...].astype(jnp.bfloat16)                       # (TB, F) bf16

    # --- Layer 1 (Linear with folded eval-mode BatchNorm), MXU, A.B^T form:
    #     (H1, F) contract-F (TB, F) -> (H1, TB)
    a1 = lax.dot_general(
        w1_ref[...], x_bf,
        dimension_numbers=(((1,), (1,)), ((), ())),
        preferred_element_type=jnp.float32)
    a1 = _leaky_relu(a1 + b1_ref[...])                           # Dropout = id (eval)

    # --- Layer 2, MXU: (H2, H1) @ (H1, TB) -> (H2, TB)
    a2 = jnp.dot(w2_ref[...], a1.astype(jnp.bfloat16),
                 preferred_element_type=jnp.float32)
    a2 = _leaky_relu(a2 + b2_ref[...])                           # Dropout = id (eval)

    # --- Layer 3 on VPU/XLU (contraction length is only H2=5: avoids a third
    #     MXU weight load + result drain per tile): (H2,1)*(H2,TB) -> sum -> (1,TB)
    out = jnp.sum(w3_ref[...] * a2, axis=0, keepdims=True) + b3_ref[...]

    o_ref[...] = out.astype(o_ref.dtype)                         # lane-dense store


def _auto_tile_b(batch, max_tile=4096):
    """Large tiles amortize the ~0.35us/step pipeline overhead; keep the grid
    extent >= 2 so the 'parallel' axis can shard across v7x's two TensorCores.
    Tiles must be a multiple of the 128-lane width."""
    if batch <= 128:
        return 128
    half = -(-batch // 2)                       # ceil(batch / 2) -> >= 2 steps
    tile = -(-half // 128) * 128                # round up to lane multiple
    return max(128, min(max_tile, tile))


@functools.partial(jax.jit, static_argnames=("tile_b",))
def regressor_forward(x, params, tile_b=None):
    """x: (B, F_in) float32 -> (B, 1) float32.  Eval-mode forward pass."""
    B, F_in = x.shape
    (w1, b1, bn_g, bn_b, bn_m, bn_v, w2, b2, w3, b3) = params
    H1 = w1.shape[0]
    H2 = w2.shape[0]

    if tile_b is None:
        tile_b = _auto_tile_b(B)
    assert tile_b % 128 == 0, "batch tile must be a multiple of the 128-lane width"

    # ---- Fold eval-mode BatchNorm1d into Linear1 (affine transform) ----
    scale = bn_g * lax.rsqrt(bn_v + BN_EPS)                   # (H1,)
    w1f = (w1 * scale[:, None]).astype(jnp.bfloat16)          # (H1, F_in) bf16 MXU input
    b1f = ((b1 - bn_m) * scale + bn_b)[:, None]               # (H1, 1) f32
    w2b = w2.astype(jnp.bfloat16)                             # (H2, H1) bf16 MXU input
    w3c = jnp.transpose(w3)                                   # (H2, 1)  f32 (VPU layer)
    b2c = b2[:, None]                                         # (H2, 1)
    b3c = b3[:, None]                                         # (1, 1)

    # Ragged batch: no explicit padding pass; Pallas boundary handling masks
    # the stores of the partial last block and we never reduce over the batch.
    grid = (pl.cdiv(B, tile_b),)

    def rep(shape):
        # Tiny parameters: block == full extents with a constant index_map,
        # so they are loaded once and not re-DMA'd per grid step.
        return pl.BlockSpec(shape, lambda i: (0,) * len(shape))

    in_specs = [
        pl.BlockSpec((tile_b, F_in), lambda i: (i, 0)),       # natural-layout x tile
        rep((H1, F_in)),                                      # w1 (BN folded, bf16)
        rep((H2, H1)),                                        # w2 (bf16)
        rep((H2, 1)),                                         # w3^T column (f32)
        rep((H1, 1)),                                         # b1 (BN folded)
        rep((H2, 1)),                                         # b2
        rep((1, 1)),                                          # b3
    ]
    out_spec = pl.BlockSpec((1, tile_b), lambda i: (0, i))    # lane-dense output

    outT = pl.pallas_call(
        mlp_kernel,
        out_shape=jax.ShapeDtypeStruct((1, B), jnp.float32),
        grid_spec=pltpu.PrefetchScalarGridSpec(
            num_scalar_prefetch=0,
            grid=grid,
            in_specs=in_specs,
            out_specs=out_spec,
        ),
        compiler_params=pltpu.CompilerParams(
            dimension_semantics=("parallel",),                # megacore split on v7x
            vmem_limit_bytes=32 * 1024 * 1024,                # headroom over v5e 16 MiB default
        ),
    )(x, w1f, w2b, w3c, b1f, b2c, b3c)

    # (1, B) -> (B, 1): layout-identical reshape, no extra HBM pass.
    return outT.reshape(B, 1)


def init_params(key, input_size, hidden_layers=(10, 5)):
    """Deterministic xavier_uniform weights / zero biases, matching init_weights().

    Weights are stored in PyTorch (out_features, in_features) layout.
    """
    h1, h2 = hidden_layers
    k1, k2, k3 = jax.random.split(key, 3)

    def xavier_uniform(k, fan_out, fan_in):
        bound = jnp.sqrt(6.0 / (fan_in + fan_out))
        return jax.random.uniform(k, (fan_out, fan_in), jnp.float32, -bound, bound)

    w1 = xavier_uniform(k1, h1, input_size)
    b1 = jnp.zeros((h1,), jnp.float32)
    # BatchNorm1d(h1) default init: gamma=1, beta=0, running_mean=0, running_var=1
    bn_g = jnp.ones((h1,), jnp.float32)
    bn_b = jnp.zeros((h1,), jnp.float32)
    bn_m = jnp.zeros((h1,), jnp.float32)
    bn_v = jnp.ones((h1,), jnp.float32)

    w2 = xavier_uniform(k2, h2, h1)
    b2 = jnp.zeros((h2,), jnp.float32)

    w3 = xavier_uniform(k3, 1, h2)
    b3 = jnp.zeros((1,), jnp.float32)

    return (w1, b1, bn_g, bn_b, bn_m, bn_v, w2, b2, w3, b3)


def reference_forward(x, params):
    """Pure-JAX f32 reference (unfolded BN, eval mode) for correctness checking."""
    (w1, b1, bn_g, bn_b, bn_m, bn_v, w2, b2, w3, b3) = params
    h1 = x @ w1.T + b1
    h1 = (h1 - bn_m) * lax.rsqrt(bn_v + BN_EPS) * bn_g + bn_b
    h1 = jnp.where(h1 >= 0, h1, LEAKY_SLOPE * h1)
    h2 = h1 @ w2.T + b2
    h2 = jnp.where(h2 >= 0, h2, LEAKY_SLOPE * h2)
    return h2 @ w3.T + b3


if __name__ == "__main__":
    key = jax.random.PRNGKey(0)
    kx, kp = jax.random.split(key)

    # Preprocessed California-housing-style features: 8 numeric + one-hot = 13.
    # Ragged batch (300) exercises boundary masking and a >=2-step parallel grid.
    B, F_IN = 300, 13
    x = jax.random.normal(kx, (B, F_IN), jnp.float32)
    params = init_params(kp, F_IN, hidden_layers=(10, 5))

    y = regressor_forward(x, params)          # auto tile -> 256 rows, grid=(2,)
    y = jax.block_until_ready(y)

    y_ref = reference_forward(x, params)
    assert y.shape == (B, 1)
    # bf16 MXU inputs (f32 accumulation) drift slightly from the f32 reference.
    assert jnp.allclose(y, y_ref, atol=5e-2, rtol=5e-2), "mismatch vs reference"

    print("KERNEL_OK")
</pallas_src>

<mosaic_0001>
module attributes {stable_mosaic.version = 11 : i64} {
  func.func @mlp_kernel(%arg0: i32, %arg1: memref<256x13xf32, #tpu.memory_space<vmem>>, %arg2: memref<10x13xbf16, #tpu.memory_space<vmem>>, %arg3: memref<5x10xbf16, #tpu.memory_space<vmem>>, %arg4: memref<5x1xf32, #tpu.memory_space<vmem>>, %arg5: memref<10x1xf32, #tpu.memory_space<vmem>>, %arg6: memref<5x1xf32, #tpu.memory_space<vmem>>, %arg7: memref<1x1xf32, #tpu.memory_space<vmem>>, %arg8: memref<1x256xf32, #tpu.memory_space<vmem>>) attributes {dimension_semantics = [#tpu.dimension_semantics<parallel>], iteration_bounds = array<i64: 2>, scalar_prefetch = 0 : i64, scratch_operands = 0 : i64, tpu.core_type = #tpu.core_type<tc>, window_params = [{transform_indices = @transform_0, window_bounds = array<i64: 256, 13>}, {pipeline_mode = #tpu.pipeline_mode<synchronous>, transform_indices = @transform_1, window_bounds = array<i64: 10, 13>}, {pipeline_mode = #tpu.pipeline_mode<synchronous>, transform_indices = @transform_2, window_bounds = array<i64: 5, 10>}, {pipeline_mode = #tpu.pipeline_mode<synchronous>, transform_indices = @transform_3, window_bounds = array<i64: 5, 1>}, {pipeline_mode = #tpu.pipeline_mode<synchronous>, transform_indices = @transform_4, window_bounds = array<i64: 10, 1>}, {pipeline_mode = #tpu.pipeline_mode<synchronous>, transform_indices = @transform_5, window_bounds = array<i64: 5, 1>}, {pipeline_mode = #tpu.pipeline_mode<synchronous>, transform_indices = @transform_6, window_bounds = array<i64: 1, 1>}, {transform_indices = @transform_7, window_bounds = array<i64: 1, 256>}]} {
    %c0 = arith.constant 0 : index
    %c0_0 = arith.constant 0 : index
    %0 = vector.load %arg1[%c0, %c0_0] : memref<256x13xf32, #tpu.memory_space<vmem>>, vector<256x13xf32>
    %1 = arith.truncf %0 : vector<256x13xf32> to vector<256x13xbf16>
    %c0_1 = arith.constant 0 : index
    %c0_2 = arith.constant 0 : index
    %2 = vector.load %arg2[%c0_1, %c0_2] : memref<10x13xbf16, #tpu.memory_space<vmem>>, vector<10x13xbf16>
    %cst = arith.constant dense<0.000000e+00> : vector<10x256xf32>
    %3 = tpu.matmul %2, %1, %cst {dimension_numbers = #tpu.dot_dimension_numbers<[1], [1], [0], [0], [0, 0, 1, 0], [], []>} : vector<10x13xbf16>, vector<256x13xbf16>, vector<10x256xf32> -> vector<10x256xf32>
    %c0_3 = arith.constant 0 : index
    %c0_4 = arith.constant 0 : index
    %4 = vector.load %arg5[%c0_3, %c0_4] : memref<10x1xf32, #tpu.memory_space<vmem>>, vector<10x1xf32>
    %5 = vector.broadcast %4 : vector<10x1xf32> to vector<10x256xf32>
    %6 = arith.addf %3, %5 : vector<10x256xf32>
    %cst_5 = arith.constant 0.000000e+00 : f32
    %7 = vector.broadcast %cst_5 : f32 to vector<10x256xf32>
    %8 = arith.cmpf oge, %6, %7 : vector<10x256xf32>
    %cst_6 = arith.constant 0.00999999977 : f32
    %9 = vector.broadcast %cst_6 : f32 to vector<10x256xf32>
    %10 = arith.mulf %9, %6 : vector<10x256xf32>
    %11 = arith.select %8, %6, %10 : vector<10x256xi1>, vector<10x256xf32>
    %c0_7 = arith.constant 0 : index
    %c0_8 = arith.constant 0 : index
    %12 = vector.load %arg3[%c0_7, %c0_8] : memref<5x10xbf16, #tpu.memory_space<vmem>>, vector<5x10xbf16>
    %13 = arith.truncf %11 : vector<10x256xf32> to vector<10x256xbf16>
    %cst_9 = arith.constant dense<0.000000e+00> : vector<5x256xf32>
    %14 = tpu.matmul %12, %13, %cst_9 {dimension_numbers = #tpu.dot_dimension_numbers<[1], [0], [0], [1], [0, 0, 1, 1], [], []>} : vector<5x10xbf16>, vector<10x256xbf16>, vector<5x256xf32> -> vector<5x256xf32>
    %c0_10 = arith.constant 0 : index
    %c0_11 = arith.constant 0 : index
    %15 = vector.load %arg6[%c0_10, %c0_11] : memref<5x1xf32, #tpu.memory_space<vmem>>, vector<5x1xf32>
    %16 = vector.broadcast %15 : vector<5x1xf32> to vector<5x256xf32>
    %17 = arith.addf %14, %16 : vector<5x256xf32>
    %cst_12 = arith.constant 0.000000e+00 : f32
    %18 = vector.broadcast %cst_12 : f32 to vector<5x256xf32>
    %19 = arith.cmpf oge, %17, %18 : vector<5x256xf32>
    %cst_13 = arith.constant 0.00999999977 : f32
    %20 = vector.broadcast %cst_13 : f32 to vector<5x256xf32>
    %21 = arith.mulf %20, %17 : vector<5x256xf32>
    %22 = arith.select %19, %17, %21 : vector<5x256xi1>, vector<5x256xf32>
    %c0_14 = arith.constant 0 : index
    %c0_15 = arith.constant 0 : index
    %23 = vector.load %arg4[%c0_14, %c0_15] : memref<5x1xf32, #tpu.memory_space<vmem>>, vector<5x1xf32>
    %24 = vector.broadcast %23 : vector<5x1xf32> to vector<5x256xf32>
    %25 = arith.mulf %24, %22 : vector<5x256xf32>
    %cst_16 = arith.constant dense<0.000000e+00> : vector<256xf32>
    %26 = vector.multi_reduction <add>, %25, %cst_16 [0] : vector<5x256xf32> to vector<256xf32>
    %27 = vector.shape_cast %26 : vector<256xf32> to vector<1x256xf32>
    %c0_17 = arith.constant 0 : index
    %c0_18 = arith.constant 0 : index
    %28 = vector.load %arg7[%c0_17, %c0_18] : memref<1x1xf32, #tpu.memory_space<vmem>>, vector<1x1xf32>
    %29 = vector.broadcast %28 : vector<1x1xf32> to vector<1x256xf32>
    %30 = arith.addf %27, %29 : vector<1x256xf32>
    %c0_19 = arith.constant 0 : index
    %c0_20 = arith.constant 0 : index
    %31 = vector.load %arg8[%c0_19, %c0_20] : memref<1x256xf32, #tpu.memory_space<vmem>>, vector<1x256xf32>
    tpu.vector_store %arg8[%c0_19, %c0_20], %30 {strides = array<i32>} : memref<1x256xf32, #tpu.memory_space<vmem>>, vector<1x256xf32>,
    return
  }
  func.func @transform_0(%arg0: i32) -> (i32, i32) {
    %c0_i32 = arith.constant 0 : i32
    %c0_i32_0 = arith.constant 0 : i32
    return %arg0, %c0_i32 : i32, i32
  }
  func.func @transform_1(%arg0: i32) -> (i32, i32) {
    %c0_i32 = arith.constant 0 : i32
    %c0_i32_0 = arith.constant 0 : i32
    %c0_i32_1 = arith.constant 0 : i32
    return %c0_i32, %c0_i32_0 : i32, i32
  }
  func.func @transform_2(%arg0: i32) -> (i32, i32) {
    %c0_i32 = arith.constant 0 : i32
    %c0_i32_0 = arith.constant 0 : i32
    %c0_i32_1 = arith.constant 0 : i32
    return %c0_i32, %c0_i32_0 : i32, i32
  }
  func.func @transform_3(%arg0: i32) -> (i32, i32) {
    %c0_i32 = arith.constant 0 : i32
    %c0_i32_0 = arith.constant 0 : i32
    %c0_i32_1 = arith.constant 0 : i32
    return %c0_i32, %c0_i32_0 : i32, i32
  }
  func.func @transform_4(%arg0: i32) -> (i32, i32) {
    %c0_i32 = arith.constant 0 : i32
    %c0_i32_0 = arith.constant 0 : i32
    %c0_i32_1 = arith.constant 0 : i32
    return %c0_i32, %c0_i32_0 : i32, i32
  }
  func.func @transform_5(%arg0: i32) -> (i32, i32) {
    %c0_i32 = arith.constant 0 : i32
    %c0_i32_0 = arith.constant 0 : i32
    %c0_i32_1 = arith.constant 0 : i32
    return %c0_i32, %c0_i32_0 : i32, i32
  }
  func.func @transform_6(%arg0: i32) -> (i32, i32) {
    %c0_i32 = arith.constant 0 : i32
    %c0_i32_0 = arith.constant 0 : i32
    %c0_i32_1 = arith.constant 0 : i32
    return %c0_i32, %c0_i32_0 : i32, i32
  }
  func.func @transform_7(%arg0: i32) -> (i32, i32) {
    %c0_i32 = arith.constant 0 : i32
    %c0_i32_0 = arith.constant 0 : i32
    return %c0_i32, %arg0 : i32, i32
  }
}

</mosaic_0001>

<bundles_post_ra>
// kernel: regressor_forward.1
= control target key start
LH: loop header
LB: loop body
LE: loop exit
PB: predicated region body
PF: predicated region fallthrough
CT: control target
= control target key end

     0   :  { %s1075_s0 = inlined_call_operand.vmem [shape: f32[300,13], index: 0, kind: input, shape index: {}]   ;;  %s1076_s1 = inlined_call_operand.vmem [shape: bf16[10,13], index: 1, kind: input, shape index: {}]   ;;  %s1077_s2 = inlined_call_operand.vmem [shape: bf16[5,10], index: 2, kind: input, shape index: {}]   ;;  %s1078_s3 = inlined_call_operand.vmem [shape: f32[5,1], index: 3, kind: input, shape index: {}]   ;;  %s1079_s4 = inlined_call_operand.vmem [shape: f32[10,1], index: 4, kind: input, shape index: {}]   ;;  %s1080_s5 = inlined_call_operand.vmem [shape: f32[5,1], index: 5, kind: input, shape index: {}]   ;;  %s1081_s6 = inlined_call_operand.<no memory space> [shape: f32[1,1], index: 6, kind: input, shape index: {}]   ;;  %s1082_s7 = inlined_call_operand.hbm [shape: f32[1,300], index: 7, kind: output, shape index: {}]  }
   0x1   :  { %v12_v0 = vstv %s1081_s6 }
   0x2   :  { %13 = vst [vmem:[#allocation2] sm:$0x1] %v12_v0 }
   0x3   :  { %14 = vsyncpa [#allocation4], 0 }
   0x4   :  { %16 = vsyncpa [#allocation4 + $0x1], 0  ;;  %s882_s26 = smov 0   ;;  %s884_s27 = smov 0  }
   0x5   :  { %s886_s28 = smov 0   ;;  %s888_s29 = smov 0  }
   0x6 LB: > { %s903_s6 = sadd.s32 4294967295, %s834_s29   ;;  %s684_s30 = sadd.s32 4294967294, %s834_s29   ;;  %s834_s29 = sphi %s888_s29, %s1088_s29   ;;  %s830_s28 = sphi %s886_s28, %s1087_s28   ;;  %s826_s27 = sphi %s884_s27, %s1086_s27   ;;  %s822_s26 = sphi %s882_s26, %s1085_s26  }
   0x7   : > { %s907_s8 = sadd.s32 1, %s834_s29   ;;  %s181_s9 = sadd.s32 1, %s830_s28 }
   0x8   : > { %s178_s10 = ssub.s32 %s834_s29, %s907_s8  ;;  %p191_p0 = scmp.ne.s32.totalorder %s830_s28, %s826_s27 }
   0x9   : > { %p179_p1 = scmp.eq.s32.totalorder %s178_s10, 0  ;;  %p192_p2 = scmp.eq.s32.totalorder %s903_s6, 1 }
   0xa   : > { %p197_p3 = scmp.ne.s32.totalorder %s826_s27, %s822_s26  ;;  %p198_p4 = scmp.eq.s32.totalorder %s684_s30, 1 }
   0xb   : > { %s918_s11 = scalar_select %p179_p1, %s830_s28, %s181_s9  }
   0xc   : > { %p920_p5 = por %p192_p2, %p191_p0  ;;  %p924_p6 = por %p198_p4, %p197_p3 }
   0xd   : > { %p687_p7 = scmp.ge.s32.totalorder %s834_s29, 1  ;;  %p251_p8 = scmp.lt.s32.totalorder %s834_s29, 3 }
   0xf   : > { %p252_p9 = pnand %p687_p7, %p251_p8 }
  0x10   : > { %s931_s14 = sshll.u32 (!%p252_p9), %s903_s6, 5  ;;  %v937_v1 = vld [vmem:[%s1076_s1] sm:$0x1f] (!%p252_p9)   ;;  %vm374_vm0 = vcmask (!%p252_p9), 105472   ;;  %v836_v3 = vmov (!%p252_p9), 0   ;;  %vm494_vm5 = vcmask (!%p252_p9), 1044480  }
  0x11   : > { %255 = sbr.rel (%p252_p9) target bundleno = 591 (0x24f), region = 48  ;;  %p292_p10 = scmp.lt.s32.totalorder (!%p252_p9), %s931_s14, 37  ;;  %v357_v2 = vld [vmem:[%s1079_s4] sm:$0xff] (!%p252_p9)  ;;  %769 = vset.pattern.permute.xlu0 (!%p252_p9), %v836_v3  ;;  %533 = vmatprep.mubr.bf16.mxu1 (!%p252_p9), %v836_v3  ;;  %v358_v4 = vld [vmem:[%s1079_s4 + $0x8] sm:$0x3] (!%p252_p9)  ;;  %vm490_vm6 = vcmask (!%p252_p9), 80896  }
  0x12   : > { %719 = vmatprep.mubr.msk.bf16.mxu0 (!%p252_p9), %vm374_vm0, %v937_v1  ;;  %361 = vperm.xlu0 (!%p252_p9), %769, %v357_v2   ;;  %v570_v5 = vld [vmem:[#allocation2] sm:$0x1] (!%p252_p9)  ;;  %s284_s18 = sand.u32 (!%p252_p9), 1, %s826_s27  }
  0x13   : > { %770 = vset.pattern.permute.xlu1 (!%p252_p9), %v836_v3  ;;  %v484_v62 = vld [vmem:[%s1080_s5] sm:$0x1f] (!%p252_p9)  ;;  %s1021_s21 = scalar_lea.sflag (!%p252_p9), [#allocation4], %s284_s18 }
  0x14   : > { %487 = vperm.xlu1 (!%p252_p9), %770, %v484_v62   ;;  %v548_v63 = vld [vmem:[%s1078_s3] sm:$0x1f] (!%p252_p9) }
  0x16   : > { %366 = vperm.xlu0 (!%p252_p9), %769, %v358_v4  }
  0x18   : > { %s293_s19 = scalar_select %p292_p10, %s931_s14, 37  ;;  %551 = vperm.xlu1 %770, %v548_v63  }
  0x1a   : > { %s690_s22 = sshll.u32 %s293_s19, 3  ;;  %573 = vperm.xlu0 %769, %v570_v5   ;;  %s688_s19 = sshll.u32 %s284_s18, 1 }
  0x1b   : > { %s951_s25 = scalar_lea.vmem %s1075_s0, %s690_s22  ;;  %s286_s20 = scalar_lea.vmem [#allocation3], %s688_s19 }
  0x1c   : > { %v323_v6 = vld [vmem:[%s951_s25 + $0x80] sm:$0xff]  ;;  %v324_v7 = vld [vmem:[%s951_s25 + $0x88] sm:$0xff]  ;;  %v325_v11 = vld [vmem:[%s951_s25 + $0x90] sm:$0xff]  ;;  %s696_s22 = sshll.u32 (%p920_p5), %s903_s6, 1 }
  0x1d   : > { %v307_v8 = vld [vmem:[%s951_s25] sm:$0xff]  ;;  %v347_v9 = vpack.c.bf16 %v324_v7, %v323_v6  ;;  %v308_v10 = vld [vmem:[%s951_s25 + $0x8] sm:$0xff]  ;;  %v326_v12 = vld [vmem:[%s951_s25 + $0x98] sm:$0xff]  ;;  %s614_s23 = ssub.s32 (%p920_p5), 3, %s696_s22 }
  0x1e   : > { %v339_v13 = vpack.c.bf16 %v308_v10, %v307_v8  ;;  %v348_v14 = vpack.c.bf16 %v326_v12, %v325_v11  ;;  %v309_v15 = vld [vmem:[%s951_s25 + $0x10] sm:$0xff]  ;;  %v310_v16 = vld [vmem:[%s951_s25 + $0x18] sm:$0xff]  ;;  %v327_v19 = vld [vmem:[%s951_s25 + $0xa0] sm:$0xff]  ;;  %p615_p11 = scmp.lt.s32.totalorder (%p920_p5), %s614_s23, 2 }
  0x1f   : > { %721 = vmatprep.subr.msk.bf16.mxu0 %vm374_vm0, %v347_v9  ;;  %v340_v18 = vpack.c.bf16 %v310_v16, %v309_v15  ;;  %v328_v20 = vld [vmem:[%s951_s25 + $0xa8] sm:$0xff]  ;;  %v311_v23 = vld [vmem:[%s951_s25 + $0x20] sm:$0xff]  ;;  %v329_v26 = vld [vmem:[%s951_s25 + $0xb0] sm:$0xff] }
  0x20   : > { %v379_v17 = vsel %vm374_vm0, %v339_v13, 0  ;;  %v349_v22 = vpack.c.bf16 %v328_v20, %v327_v19  ;;  %v312_v24 = vld [vmem:[%s951_s25 + $0x28] sm:$0xff]  ;;  %v330_v27 = vld [vmem:[%s951_s25 + $0xb8] sm:$0xff]  ;;  %v313_v30 = vld [vmem:[%s951_s25 + $0x30] sm:$0xff] }
  0x21   : > { %704 = vmatpush3.bf16.xpose.msra.mxu0 %v379_v17  ;;  %v382_v21 = vsel %vm374_vm0, %v340_v18, 0  ;;  %v341_v25 = vpack.c.bf16 %v312_v24, %v311_v23  ;;  %v350_v29 = vpack.c.bf16 %v330_v27, %v329_v26  ;;  %v314_v31 = vld [vmem:[%s951_s25 + $0x38] sm:$0xff]  ;;  %v331_v33 = vld [vmem:[%s951_s25 + $0xc0] sm:$0xff]  ;;  %v332_v34 = vld [vmem:[%s951_s25 + $0xc8] sm:$0xff] }
  0x22   : > { %722 = vmatprep.subr.msk.bf16.mxu0 %vm374_vm0, %v348_v14  ;;  %v342_v32 = vpack.c.bf16 %v314_v31, %v313_v30  ;;  %v351_v36 = vpack.c.bf16 %v332_v34, %v331_v33  ;;  %v315_v37 = vld [vmem:[%s951_s25 + $0x40] sm:$0xff]  ;;  %v316_v38 = vld [vmem:[%s951_s25 + $0x48] sm:$0xff]  ;;  %v333_v40 = vld [vmem:[%s951_s25 + $0xd0] sm:$0xff] }
  0x23   : > { %v385_v28 = vsel %vm374_vm0, %v341_v25, 0  ;;  %v343_v39 = vpack.c.bf16 %v316_v38, %v315_v37  ;;  %v334_v41 = vld [vmem:[%s951_s25 + $0xd8] sm:$0xff]  ;;  %v317_v44 = vld [vmem:[%s951_s25 + $0x50] sm:$0xff]  ;;  %v335_v47 = vld [vmem:[%s951_s25 + $0xe0] sm:$0xff] }
  0x24   : > { %v388_v35 = vsel %vm374_vm0, %v342_v32, 0  ;;  %v352_v43 = vpack.c.bf16 %v334_v41, %v333_v40  ;;  %v318_v45 = vld [vmem:[%s951_s25 + $0x58] sm:$0xff]  ;;  %v336_v48 = vld [vmem:[%s951_s25 + $0xe8] sm:$0xff]  ;;  %v319_v51 = vld [vmem:[%s951_s25 + $0x60] sm:$0xff] }
  0x25   : > { %v391_v42 = vsel %vm374_vm0, %v343_v39, 0  ;;  %v344_v46 = vpack.c.bf16 %v318_v45, %v317_v44  ;;  %v353_v50 = vpack.c.bf16 %v336_v48, %v335_v47  ;;  %v320_v52 = vld [vmem:[%s951_s25 + $0x68] sm:$0xff]  ;;  %v337_v54 = vld [vmem:[%s951_s25 + $0xf0] sm:$0xff]  ;;  %v338_v55 = vld [vmem:[%s951_s25 + $0xf8] sm:$0xff]  ;;  %v837_v45 = vmov 1966171168  }
  0x26   : > { %v345_v53 = vpack.c.bf16 %v320_v52, %v319_v51  ;;  %v354_v57 = vpack.c.bf16 %v338_v55, %v337_v54  ;;  %v321_v58 = vld [vmem:[%s951_s25 + $0x70] sm:$0xff]  ;;  %v322_v59 = vld [vmem:[%s951_s25 + $0x78] sm:$0xff] }
  0x27   : > { %v394_v49 = vsel %vm374_vm0, %v344_v46, 0  ;;  %v346_v60 = vpack.c.bf16 %v322_v59, %v321_v58  ;;  %v586_v46 = vunpack.c.l.s4 %v837_v45 }
  0x28   : > { %v397_v56 = vsel %vm374_vm0, %v345_v53, 0 }
  0x29   : > { %706 = vmatpush3.bf16.xpose.msra.mxu0 %v382_v21  ;;  %v400_v61 = vsel %vm374_vm0, %v346_v60, 0  ;;  %v481_v21 = vld [vmem:[%s1077_s2] sm:$0x7]  ;;  %v587_v53 = vunpack.c.0.s8 %v586_v46 }
  0x2a   : > { %723 = vmatprep.subr.msk.bf16.mxu0 %vm374_vm0, %v349_v22 }
  0x31   : > { %708 = vmatpush3.bf16.xpose.msra.mxu0 %v385_v28 }
  0x32   : > { %724 = vmatprep.subr.msk.bf16.mxu0 %vm374_vm0, %v350_v29 }
  0x39   : > { %710 = vmatpush3.bf16.xpose.msra.mxu0 %v388_v35  ;;  %v576_v35 = vlaneseq }
  0x3a   : > { %725 = vmatprep.subr.msk.bf16.mxu0 %vm374_vm0, %v351_v36 }
  0x3b   : > { %v577_v41 = vshrl.u32 %v576_v35, 7  ;;  %vm602_vm9 = vcmp.lt.s32.totalorder %v576_v35, 256 }
  0x3d   : > { %v578_v48 = vsub.s32 0, %v577_v41  ;;  %v590_v59 = vsub.s32 %v587_v53, %v577_v41 }
  0x41   : > { %712 = vmatpush3.bf16.xpose.msra.mxu0 %v391_v42 }
  0x42   : > { %726 = vmatprep.subr.msk.bf16.mxu0 %vm374_vm0, %v352_v43 }
  0x49   : > { %714 = vmatpush3.bf16.xpose.msra.mxu0 %v394_v49 }
  0x4a   : > { %727 = vmatprep.subr.msk.bf16.mxu0 %vm374_vm0, %v353_v50 }
  0x51   : > { %716 = vmatpush3.bf16.xpose.msra.mxu0 %v397_v56 }
  0x52   : > { %728 = vmatprep.subr.msk.bf16.mxu0 %vm374_vm0, %v354_v57 }
  0x59   : > { %718 = vmatpush3.bf16.xpose.msra.mxu0 %v400_v61 }
  0x60   : > { %720 = vmatmul.mubr.msk.bf16.vlgmr.msra.gmra.mrb[0].mxu0 %vm374_vm0, %v937_v1 }
  0x91   : > { %v362_v0 = vpop.permute.xlu0 %361 }
  0x93   : > { %v488_v22 = vpop.permute.xlu1 %487 }
  0x95   : > { %v367_v5 = vpop.permute.xlu0 %366 }
  0x97   : > { %v552_v31 = vpop.permute.xlu1 %551 }
  0x99   : > { %v574_v50 = vpop.permute.xlu0 %573 }
  0x9a   : > { %v579_v55 = vrot.slane %v574_v50, %v578_v48 }
 0x133   : > { %v460_v2 = vpop.f32.mrb[0].mxu0 }
 0x134   : > { %v461_v3 = vadd.f32 %v460_v2, %v362_v0  ;;  %v462_v4 = vpop.f32.mrb[1].mxu0 }
 0x135   : > { %v463_v6 = vadd.f32 %v462_v4, %v362_v0  ;;  %v464_v7 = vpop.f32.mrb[2].mxu0 }
 0x136   : > { %v473_v8 = vmul.f32 0.01, %v461_v3  ;;  %v465_v9 = vadd.f32 %v464_v7, %v367_v5  ;;  %v466_v1 = vpop.f32.mrb[3].mxu0  ;;  %vm469_vm1 = vcmp.ge.f32.partialorder %v461_v3, 0.0 }
 0x137   : > { %v474_v10 = vmul.f32 0.01, %v463_v6  ;;  %v467_v11 = vadd.f32 %v466_v1, %v367_v5  ;;  %vm470_vm3 = vcmp.ge.f32.partialorder %v463_v6, 0.0 }
 0x138   : > { %vm471_vm2 = vcmp.ge.f32.partialorder %v465_v9, 0.0  ;;  %v475_v12 = vmul.f32 0.01, %v465_v9  ;;  %v477_v14 = vsel %vm469_vm1, %v461_v3, %v473_v8 }
 0x139   : > { %v476_v13 = vmul.f32 0.01, %v467_v11  ;;  %vm472_vm4 = vcmp.ge.f32.partialorder %v467_v11, 0.0  ;;  %v478_v16 = vsel %vm470_vm3, %v463_v6, %v474_v10 }
 0x13a   : > { %v479_v15 = vsel %vm471_vm2, %v465_v9, %v475_v12 }
 0x13b   : > { %v480_v17 = vsel %vm472_vm4, %v467_v11, %v476_v13  ;;  %v482_v18 = vpack.c.bf16 %v479_v15, %v477_v14 }
 0x13c   : > { %v483_v19 = vpack.c.bf16 %v480_v17, %v478_v16 }
 0x13d   : > { %v496_v20 = vsel %vm494_vm5, %v482_v18, 0 }
 0x13e   : > { %693 = vmatprep.subr.msk.bf16.mxu1 %vm494_vm5, %v483_v19 }
 0x13f   : > { %502 = vmatpush1.bf16.msra.mxu1 %v496_v20 }
 0x142   : > { %694 = vmatmul.mubr.msk.bf16.vlgmr.msra.gmra.mrb[0].mxu1 %vm490_vm6, %v481_v21 }
 0x215   : > { %v535_v23 = vpop.f32.mrb[0].mxu1 }
 0x216   : > { %v536_v24 = vadd.f32 %v535_v23, %v488_v22  ;;  %v537_v25 = vpop.f32.mrb[1].mxu1 }
 0x217   : > { %v538_v26 = vadd.f32 %v537_v25, %v488_v22  ;;  %v539_v27 = vpop.f32.mrb[2].mxu1 }
 0x218   : > { %v544_v28 = vmul.f32 0.01, %v536_v24  ;;  %vm542_vm7 = vcmp.ge.f32.partialorder %v536_v24, 0.0  ;;  %v540_v29 = vpop.f32.mrb[3].mxu1 }
 0x219   : > { %vm543_vm8 = vcmp.ge.f32.partialorder %v538_v26, 0.0  ;;  %v545_v30 = vmul.f32 0.01, %v538_v26 }
 0x21a   : > { %v546_v32 = vsel %vm542_vm7, %v536_v24, %v544_v28 }
 0x21b   : > { %v554_v33 = vmul.f32 %v552_v31, %v546_v32  ;;  %v547_v34 = vsel %vm543_vm8, %v538_v26, %v545_v30 }
 0x21c   : > { %v555_v36 = vmul.f32 %v552_v31, %v547_v34 }
 0x21d   : > { %v556_v37 = vsel %vm494_vm5, %v554_v33, 0.0 }
 0x21e   : > { %v557_v38 = vrot.slane %v556_v37, 4  ;;  %v563_v39 = vsel %vm494_vm5, %v555_v36, 0.0 }
 0x21f   : > { %v564_v40 = vrot.slane %v563_v39, 4 }
 0x220   : > { %v558_v42 = vadd.f32 %v557_v38, %v556_v37 }
 0x221   : > { %v565_v43 = vadd.f32 %v564_v40, %v563_v39 }
 0x222   : > { %v559_v44 = vrot.slane %v558_v42, 2 }
 0x223   : > { %v566_v47 = vrot.slane %v565_v43, 2 }
 0x224   : > { %v560_v49 = vadd.f32 %v559_v44, %v558_v42 }
 0x225   : > { %v567_v51 = vadd.f32 %v566_v47, %v565_v43 }
 0x226   : > { %v561_v52 = vrot.slane %v560_v49, 1 }
 0x227   : > { %v568_v54 = vrot.slane %v567_v51, 1 }
 0x228   : > { %v562_v56 = vadd.f32 %v561_v52, %v560_v49 }
 0x229   : > { %v569_v57 = vadd.f32 %v568_v54, %v567_v51 }
 0x22a   : > { %v580_v58 = vadd.f32 %v579_v55, %v562_v56 }
 0x22b   : > { %v581_v60 = vadd.f32 %v579_v55, %v569_v57 }
 0x22d   : > { %v584_v61 = vcombine.low %v580_v58, %v581_v60  ;;  %612 = sbr.rel (!%p920_p5) target bundleno = 591 (0x24f), region = 52 }
 0x22f   : > { %v591_v62 = vrot.slane %v584_v61, %v590_v59 }
 0x231   : > { %v598_v63 = vrot.slane %v591_v62, %v590_v59 }
 0x233   : > { %604 = vst.msk [vmem:[%s286_s20] sm:$0x3] %vm602_vm9, %v598_v63 }
 0x234   : > { %s1090_s23 = smov (!%p615_p11, %s614_s23), 2 }
 0x235   : > { %s1026_s24 = sshll.u32 %s1090_s23, 4 }
 0x236   : > { %s619_s25 = ssub.s32 32, %s1026_s24 }
 0x237   : > { %620 = vsyncadd %s1021_s21, %s619_s25  ;;  %p698_p12 = scmp.ne.s32.totalorder %s1026_s24, 0  ;;  %s1035_s12 = scalar_lea.hbm %s1082_s7, %s931_s14 }
 0x238   : > { %s625_s10 = sshll.u32 %s286_s20, 4  ;;  %s838_s15 = smov [#allocation3]   ;;  %s626_s10 = int_to_ptr.vmem [resolvable:$true] %s625_s10 }
 0x239   : > { %s772_s6 = scalar_lea.vmem %s626_s10, %s1026_s24  ;;  %s776_s16 = sshll.u32 %s838_s15, 4  ;;  %s777_s16 = int_to_ptr.vmem [resolvable:$false] %s776_s16 }
 0x23a   : > { %p773_p13 = scmp.ne.s32.totalorder %s626_s10, %s772_s6  ;;  %s778_s17 = scalar_lea.vmem %s777_s16, 64 }
 0x23b   : > { %p779_p2 = scmp.lt.s32.totalorder %s626_s10, %s777_s16  ;;  %p780_p3 = scmp.lt.s32.totalorder %s778_s17, %s772_s6 }
 0x23c   : > { %p774_p0 = pnand %p773_p13, %p698_p12 }
 0x23d   : > { %p781_p4 = por %p780_p3, %p779_p2 }
 0x23e   : > { %p775_p1 = pneg %p774_p0 }
 0x240   : > { %p782_p5 = pnand %p781_p4, %p775_p1 }
 0x242   : > { %785 = shalt.err (!%p782_p5)
}
 0x243   : > { %s786_s14 = scalar_lea.hbm %s1035_s12, %s1026_s24  ;;  %s790_s20 = scalar_lea.hbm %s1082_s7, 48 }
 0x244   : > { %p787_p7 = scmp.ne.s32.totalorder %s1035_s12, %s786_s14  ;;  %p791_p10 = scmp.lt.u32.totalorder %s1035_s12, %s1082_s7 }
 0x245   : > { %p792_p11 = scmp.lt.u32.totalorder %s790_s20, %s786_s14  ;;  %p794_p0 = scmp.lt.u32.totalorder %s786_s14, %s1035_s12 }
 0x246   : > { %p788_p8 = pnand %p787_p7, %p698_p12 }
 0x247   : > { %p793_p13 = por %p792_p11, %p791_p10 }
 0x248   : > { %p789_p9 = pneg %p788_p8 }
 0x249   : > { %p795_p1 = por %p794_p0, %p793_p13 }
 0x24b   : > { %p796_p2 = pnand %p795_p1, %p789_p9 }
 0x24d   : > { %799 = shalt.err (!%p796_p2)
}
 0x24e   : > { %628 = dma.vmem_to_hbm [thread:$0]  (%p698_p12), %s626_s10, %s1026_s24, %s1035_s12, %s1021_s21  }
 0x24f PF: > { %p734_p3 = scmp.ge.s32.totalorder %s834_s29, 2  ;;  %s637_s25 = sand.u32 1, %s822_s26  }
 0x250   : > { %s638_s30 = scalar_lea.sflag [#allocation4], %s637_s25 }
 0x251   : > { %p731_p4 = pnand %p734_p3, %p924_p6 }
 0x253   : > { %817 = dma.done.wait (!%p731_p4), %s638_s30, 32  }
 0x254   : > { %819 = vsyncadd (!%p731_p4), %s638_s30, 4294967264  ;;  %p19_p5 = scmp.ge.s32.totalorder %s907_s8, 4   ;;  %s1085_s26 = smov %s826_s27 }
 0x255   : > { %s1086_s27 = smov %s830_s28  ;;  %s1087_s28 = smov %s918_s11 }
 0x256   : > { %s1088_s29 = smov %s907_s8  ;;  %21 = sbr.rel (!%p19_p5) target bundleno = 6 (0x6), region = 83 }
 0x25d   :  { %643 = vsyncpa [#allocation4], 1 }
 0x25e   :  { %645 = vsyncpa [#allocation4 + $0x1], 1 }

</bundles_post_ra>
